<compile_context>
chip_gen: v7x
topology: tpu7x:2x2x1
jax: 0.10.0
libtpu: 0.0.40
codegen_flags: <defaults>
</compile_context>

<pallas_src>
import functools

import jax
import jax.numpy as jnp
from jax import lax
from jax.experimental import pallas as pl
from jax.experimental.pallas import tpu as pltpu

LOG_STD_MIN = -5.0
LOG_STD_MAX = 2.0
LOG_STD_SCALE = 0.5 * (LOG_STD_MAX - LOG_STD_MIN)          # 3.5
LOG_STD_SHIFT = LOG_STD_MIN + LOG_STD_SCALE                # -1.5
HIDDEN = 256


def _round_up(x, m):
    return ((x + m - 1) // m) * m


def _default_bf16_intermediates():
    """bf16 elementwise path on v6e/v7x (bf16 VPU); keep f32 path on v5e."""
    try:
        kind = jax.devices()[0].device_kind.lower()
    except Exception:
        return True
    return not ("v5 lite" in kind or "v5lite" in kind or "v5e" in kind)


def actor_kernel(x_ref, w1_ref, b1_ref, w2_ref, b2_ref, wh_ref, bh_ref,
                 out_ref, *, dim_action, bf16_ew):
    f32 = jnp.float32
    bf16 = jnp.bfloat16

    # fc1 (bf16 MXU inputs, f32 accumulation)
    h1 = jnp.dot(x_ref[...], w1_ref[...], preferred_element_type=f32)
    if bf16_ew:
        # Downcast immediately after the dot; bias-add + relu in bf16 halves the
        # (TB,256) intermediate footprint / ld-st slot pressure (v6e/v7x bf16 VPU).
        h1 = jnp.maximum(h1.astype(bf16) + b1_ref[...], 0.0)
        h2 = jnp.dot(h1, w2_ref[...], preferred_element_type=f32)
        h2 = jnp.maximum(h2.astype(bf16) + b2_ref[...], 0.0)
    else:
        # v5e: no bf16 VPU -> keep elementwise in f32, downcast only for the MXU.
        h1 = jnp.maximum(h1 + b1_ref[...], 0.0)
        h2 = jnp.dot(h1.astype(bf16), w2_ref[...], preferred_element_type=f32)
        h2 = jnp.maximum(h2 + b2_ref[...], 0.0).astype(bf16)

    # Fused heads: columns [0, A) = mean, [A, 2A) = log_std, rest zero padding.
    head = jnp.dot(h2, wh_ref[...], preferred_element_type=f32) + bh_ref[...]

    # tanh squash + rescale (FMA form), applied only to the log_std columns.
    ls = LOG_STD_SCALE * jnp.tanh(head) + LOG_STD_SHIFT
    col = lax.broadcasted_iota(jnp.int32, head.shape, 1)
    out_ref[...] = jnp.where(col >= dim_action, ls, head).astype(out_ref.dtype)


def prepare_params(params, *, use_bf16_intermediates=None):
    """One-time param prep: head fusion + bf16 casts (hoisted out of the hot path)."""
    if use_bf16_intermediates is None:
        use_bf16_intermediates = _default_bf16_intermediates()

    A = params["wm"].shape[1]
    head_pad = _round_up(2 * A, 128)      # keep at 128 for A<=64 (guardrail)

    wh = jnp.zeros((HIDDEN, head_pad), jnp.float32)
    wh = wh.at[:, :A].set(params["wm"]).at[:, A:2 * A].set(params["ws"])
    bh = jnp.zeros((1, head_pad), jnp.float32)
    bh = bh.at[:, :A].set(params["bm"]).at[:, A:2 * A].set(params["bs"])

    bf16 = jnp.bfloat16
    ew_dtype = bf16 if use_bf16_intermediates else jnp.float32
    return dict(
        w1=params["w1"].astype(bf16), b1=params["b1"].astype(ew_dtype),
        w2=params["w2"].astype(bf16), b2=params["b2"].astype(ew_dtype),
        wh=wh.astype(bf16), bh=bh,                       # head bias stays f32
        dim_action=A, head_pad=head_pad, bf16_ew=bool(use_bf16_intermediates),
    )


def actor_forward_padded(x, prepped, *, block_b=2048):
    """Returns the padded (b_pad, head_pad) f32 slab; slice mean/log_std at use-site."""
    B, dim_obs = x.shape
    head_pad = prepped["head_pad"]

    # Batch tiling: large tiles to amortize per-step pipeline overhead, but keep
    # >= 2 grid steps whenever possible so v7x megacore can shard the batch axis.
    b_pad128 = _round_up(max(B, 1), 128)
    tb = max(128, min(block_b, b_pad128))
    if b_pad128 >= 256 and b_pad128 // tb < 2:
        tb = max(128, ((b_pad128 // 2) // 128) * 128)
    b_pad = _round_up(B, tb)

    x_p = x if b_pad == B else jnp.pad(x, ((0, b_pad - B), (0, 0)))
    args = (x_p.astype(jnp.bfloat16),
            prepped["w1"], prepped["b1"], prepped["w2"], prepped["b2"],
            prepped["wh"], prepped["bh"])

    def resident(shape):
        # weight/bias: constant block index -> stays resident in VMEM across grid steps
        nd = len(shape)
        return pl.BlockSpec(shape, lambda i, _nd=nd: (0,) * _nd)

    return pl.pallas_call(
        functools.partial(actor_kernel, dim_action=prepped["dim_action"],
                          bf16_ew=prepped["bf16_ew"]),
        out_shape=jax.ShapeDtypeStruct((b_pad, head_pad), jnp.float32),
        grid=(b_pad // tb,),
        in_specs=[pl.BlockSpec((tb, dim_obs), lambda i: (i, 0))]
                 + [resident(a.shape) for a in args[1:]],
        out_specs=pl.BlockSpec((tb, head_pad), lambda i: (i, 0)),
        compiler_params=pltpu.CompilerParams(
            dimension_semantics=("parallel",),
            vmem_limit_bytes=32 << 20,
        ),
    )(*args)


def actor_forward(x, prepped, *, block_b=2048):
    """x: (B, dim_obs) f32. Returns (mean, log_std), each (B, dim_action) f32.

    For best perf, jit this together with the downstream consumer (or use
    actor_forward_padded) so the column slicing fuses instead of re-reading the slab.
    """
    out = actor_forward_padded(x, prepped, block_b=block_b)
    B = x.shape[0]
    A = prepped["dim_action"]
    return out[:B, :A], out[:B, A:2 * A]


def init_params(key, dim_observation, dim_action, hidden=HIDDEN):
    """PyTorch nn.Linear-style init: U(-1/sqrt(fan_in), 1/sqrt(fan_in))."""
    ks = jax.random.split(key, 8)

    def linear(kw, kb, fan_in, fan_out):
        bound = 1.0 / jnp.sqrt(fan_in)
        w = jax.random.uniform(kw, (fan_in, fan_out), jnp.float32, -bound, bound)
        b = jax.random.uniform(kb, (1, fan_out), jnp.float32, -bound, bound)
        return w, b

    w1, b1 = linear(ks[0], ks[1], dim_observation, hidden)
    w2, b2 = linear(ks[2], ks[3], hidden, hidden)
    wm, bm = linear(ks[4], ks[5], hidden, dim_action)
    ws, bs = linear(ks[6], ks[7], hidden, dim_action)
    return dict(w1=w1, b1=b1, w2=w2, b2=b2, wm=wm, bm=bm, ws=ws, bs=bs)


def actor_forward_ref(x, params, *, bf16_ew):
    """Pure-JAX reference mirroring the kernel's precision choices
    (bf16 MXU inputs, f32 accumulation, optional bf16 elementwise intermediates)."""
    bf16 = jnp.bfloat16

    def mm(a, w):
        return jnp.dot(a.astype(bf16), w.astype(bf16),
                       preferred_element_type=jnp.float32)

    if bf16_ew:
        h1 = jnp.maximum(mm(x, params["w1"]).astype(bf16)
                         + params["b1"].astype(bf16), 0.0)
        h2 = jnp.maximum(mm(h1, params["w2"]).astype(bf16)
                         + params["b2"].astype(bf16), 0.0)
    else:
        h1 = jnp.maximum(mm(x, params["w1"]) + params["b1"], 0.0)
        h2 = jnp.maximum(mm(h1, params["w2"]) + params["b2"], 0.0)

    mean = mm(h2, params["wm"]) + params["bm"]
    ls = LOG_STD_SCALE * jnp.tanh(mm(h2, params["ws"]) + params["bs"]) + LOG_STD_SHIFT
    return mean, ls


if __name__ == "__main__":
    key = jax.random.PRNGKey(0)
    k_params, k_x = jax.random.split(key)

    batch = 8
    dim_observation = 32
    dim_action = 4

    params = init_params(k_params, dim_observation, dim_action)
    prepped = prepare_params(params)          # one-time: fuse heads + cast weights
    x = jax.random.normal(k_x, (batch, dim_observation), jnp.float32)

    mean, log_std = actor_forward(x, prepped)
    jax.block_until_ready((mean, log_std))

    mean_ref, log_std_ref = actor_forward_ref(x, params, bf16_ew=prepped["bf16_ew"])
    assert mean.shape == (batch, dim_action)
    assert log_std.shape == (batch, dim_action)
    assert jnp.allclose(mean, mean_ref, atol=2e-3, rtol=2e-3)
    assert jnp.allclose(log_std, log_std_ref, atol=2e-3, rtol=2e-3)
    assert bool(jnp.all(log_std >= LOG_STD_MIN)) and bool(jnp.all(log_std <= LOG_STD_MAX))

    print("KERNEL_OK")
</pallas_src>

<mosaic_0001>
module attributes {stable_mosaic.version = 11 : i64} {
  func.func @actor_kernel(%arg0: i32, %arg1: memref<128x32xbf16, #tpu.memory_space<vmem>>, %arg2: memref<32x256xbf16, #tpu.memory_space<vmem>>, %arg3: memref<1x256xbf16, #tpu.memory_space<vmem>>, %arg4: memref<256x256xbf16, #tpu.memory_space<vmem>>, %arg5: memref<1x256xbf16, #tpu.memory_space<vmem>>, %arg6: memref<256x128xbf16, #tpu.memory_space<vmem>>, %arg7: memref<1x128xf32, #tpu.memory_space<vmem>>, %arg8: memref<128x128xf32, #tpu.memory_space<vmem>>) attributes {dimension_semantics = [#tpu.dimension_semantics<parallel>], iteration_bounds = array<i64: 1>, scalar_prefetch = 0 : i64, scratch_operands = 0 : i64, tpu.core_type = #tpu.core_type<tc>, window_params = [{transform_indices = @transform_0, window_bounds = array<i64: 128, 32>}, {pipeline_mode = #tpu.pipeline_mode<synchronous>, transform_indices = @transform_1, window_bounds = array<i64: 32, 256>}, {pipeline_mode = #tpu.pipeline_mode<synchronous>, transform_indices = @transform_2, window_bounds = array<i64: 1, 256>}, {pipeline_mode = #tpu.pipeline_mode<synchronous>, transform_indices = @transform_3, window_bounds = array<i64: 256, 256>}, {pipeline_mode = #tpu.pipeline_mode<synchronous>, transform_indices = @transform_4, window_bounds = array<i64: 1, 256>}, {pipeline_mode = #tpu.pipeline_mode<synchronous>, transform_indices = @transform_5, window_bounds = array<i64: 256, 128>}, {pipeline_mode = #tpu.pipeline_mode<synchronous>, transform_indices = @transform_6, window_bounds = array<i64: 1, 128>}, {transform_indices = @transform_7, window_bounds = array<i64: 128, 128>}]} {
    %c0 = arith.constant 0 : index
    %c0_0 = arith.constant 0 : index
    %0 = vector.load %arg1[%c0, %c0_0] : memref<128x32xbf16, #tpu.memory_space<vmem>>, vector<128x32xbf16>
    %c0_1 = arith.constant 0 : index
    %c0_2 = arith.constant 0 : index
    %1 = vector.load %arg2[%c0_1, %c0_2] : memref<32x256xbf16, #tpu.memory_space<vmem>>, vector<32x256xbf16>
    %cst = arith.constant dense<0.000000e+00> : vector<128x256xf32>
    %2 = tpu.matmul %0, %1, %cst {dimension_numbers = #tpu.dot_dimension_numbers<[1], [0], [0], [1], [0, 0, 1, 1], [], []>} : vector<128x32xbf16>, vector<32x256xbf16>, vector<128x256xf32> -> vector<128x256xf32>
    %3 = arith.truncf %2 : vector<128x256xf32> to vector<128x256xbf16>
    %c0_3 = arith.constant 0 : index
    %c0_4 = arith.constant 0 : index
    %4 = vector.load %arg3[%c0_3, %c0_4] : memref<1x256xbf16, #tpu.memory_space<vmem>>, vector<1x256xbf16>
    %5 = vector.broadcast %4 : vector<1x256xbf16> to vector<128x256xbf16>
    %6 = arith.addf %3, %5 : vector<128x256xbf16>
    %cst_5 = arith.constant 0.000000e+00 : bf16
    %7 = vector.broadcast %cst_5 : bf16 to vector<128x256xbf16>
    %8 = arith.maximumf %6, %7 : vector<128x256xbf16>
    %c0_6 = arith.constant 0 : index
    %c0_7 = arith.constant 0 : index
    %9 = vector.load %arg4[%c0_6, %c0_7] : memref<256x256xbf16, #tpu.memory_space<vmem>>, vector<256x256xbf16>
    %cst_8 = arith.constant dense<0.000000e+00> : vector<128x256xf32>
    %10 = tpu.matmul %8, %9, %cst_8 {dimension_numbers = #tpu.dot_dimension_numbers<[1], [0], [0], [1], [0, 0, 1, 1], [], []>} : vector<128x256xbf16>, vector<256x256xbf16>, vector<128x256xf32> -> vector<128x256xf32>
    %11 = arith.truncf %10 : vector<128x256xf32> to vector<128x256xbf16>
    %c0_9 = arith.constant 0 : index
    %c0_10 = arith.constant 0 : index
    %12 = vector.load %arg5[%c0_9, %c0_10] : memref<1x256xbf16, #tpu.memory_space<vmem>>, vector<1x256xbf16>
    %13 = vector.broadcast %12 : vector<1x256xbf16> to vector<128x256xbf16>
    %14 = arith.addf %11, %13 : vector<128x256xbf16>
    %cst_11 = arith.constant 0.000000e+00 : bf16
    %15 = vector.broadcast %cst_11 : bf16 to vector<128x256xbf16>
    %16 = arith.maximumf %14, %15 : vector<128x256xbf16>
    %c0_12 = arith.constant 0 : index
    %c0_13 = arith.constant 0 : index
    %17 = vector.load %arg6[%c0_12, %c0_13] : memref<256x128xbf16, #tpu.memory_space<vmem>>, vector<256x128xbf16>
    %cst_14 = arith.constant dense<0.000000e+00> : vector<128x128xf32>
    %18 = tpu.matmul %16, %17, %cst_14 {dimension_numbers = #tpu.dot_dimension_numbers<[1], [0], [0], [1], [0, 0, 1, 1], [], []>} : vector<128x256xbf16>, vector<256x128xbf16>, vector<128x128xf32> -> vector<128x128xf32>
    %c0_15 = arith.constant 0 : index
    %c0_16 = arith.constant 0 : index
    %19 = vector.load %arg7[%c0_15, %c0_16] : memref<1x128xf32, #tpu.memory_space<vmem>>, vector<1x128xf32>
    %20 = vector.broadcast %19 : vector<1x128xf32> to vector<128x128xf32>
    %21 = arith.addf %18, %20 : vector<128x128xf32>
    %22 = math.tanh %21 : vector<128x128xf32>
    %cst_17 = arith.constant 3.500000e+00 : f32
    %23 = vector.broadcast %cst_17 : f32 to vector<128x128xf32>
    %24 = arith.mulf %23, %22 : vector<128x128xf32>
    %cst_18 = arith.constant -1.500000e+00 : f32
    %25 = vector.broadcast %cst_18 : f32 to vector<128x128xf32>
    %26 = arith.addf %24, %25 : vector<128x128xf32>
    %27 = tpu.iota {dimensions = array<i32: 1>} : vector<128x128xi32>
    %c4_i32 = arith.constant 4 : i32
    %28 = vector.broadcast %c4_i32 : i32 to vector<128x128xi32>
    %29 = arith.cmpi sge, %27, %28 : vector<128x128xi32>
    %30 = arith.select %29, %26, %21 : vector<128x128xi1>, vector<128x128xf32>
    %c0_19 = arith.constant 0 : index
    %c0_20 = arith.constant 0 : index
    %31 = vector.load %arg8[%c0_19, %c0_20] : memref<128x128xf32, #tpu.memory_space<vmem>>, vector<128x128xf32>
    tpu.vector_store %arg8[%c0_19, %c0_20], %30 {strides = array<i32>} : memref<128x128xf32, #tpu.memory_space<vmem>>, vector<128x128xf32>,
    return
  }
  func.func @transform_0(%arg0: i32) -> (i32, i32) {
    %c0_i32 = arith.constant 0 : i32
    %c0_i32_0 = arith.constant 0 : i32
    return %arg0, %c0_i32 : i32, i32
  }
  func.func @transform_1(%arg0: i32) -> (i32, i32) {
    %c0_i32 = arith.constant 0 : i32
    %c0_i32_0 = arith.constant 0 : i32
    %c0_i32_1 = arith.constant 0 : i32
    return %c0_i32, %c0_i32_0 : i32, i32
  }
  func.func @transform_2(%arg0: i32) -> (i32, i32) {
    %c0_i32 = arith.constant 0 : i32
    %c0_i32_0 = arith.constant 0 : i32
    %c0_i32_1 = arith.constant 0 : i32
    return %c0_i32, %c0_i32_0 : i32, i32
  }
  func.func @transform_3(%arg0: i32) -> (i32, i32) {
    %c0_i32 = arith.constant 0 : i32
    %c0_i32_0 = arith.constant 0 : i32
    %c0_i32_1 = arith.constant 0 : i32
    return %c0_i32, %c0_i32_0 : i32, i32
  }
  func.func @transform_4(%arg0: i32) -> (i32, i32) {
    %c0_i32 = arith.constant 0 : i32
    %c0_i32_0 = arith.constant 0 : i32
    %c0_i32_1 = arith.constant 0 : i32
    return %c0_i32, %c0_i32_0 : i32, i32
  }
  func.func @transform_5(%arg0: i32) -> (i32, i32) {
    %c0_i32 = arith.constant 0 : i32
    %c0_i32_0 = arith.constant 0 : i32
    %c0_i32_1 = arith.constant 0 : i32
    return %c0_i32, %c0_i32_0 : i32, i32
  }
  func.func @transform_6(%arg0: i32) -> (i32, i32) {
    %c0_i32 = arith.constant 0 : i32
    %c0_i32_0 = arith.constant 0 : i32
    %c0_i32_1 = arith.constant 0 : i32
    return %c0_i32, %c0_i32_0 : i32, i32
  }
  func.func @transform_7(%arg0: i32) -> (i32, i32) {
    %c0_i32 = arith.constant 0 : i32
    %c0_i32_0 = arith.constant 0 : i32
    return %arg0, %c0_i32 : i32, i32
  }
}

</mosaic_0001>

<bundles_post_ra>
// kernel: tpu_custom_call.1
= control target key start
LH: loop header
LB: loop body
LE: loop exit
PB: predicated region body
PF: predicated region fallthrough
CT: control target
= control target key end

     0   :  { %12 = vsyncpa [#allocation3], 0  ;;  %s1701_s0 = inlined_call_operand.vmem [shape: bf16[128,32], index: 0, kind: input, shape index: {}]   ;;  %s1702_s1 = inlined_call_operand.vmem [shape: bf16[32,256], index: 1, kind: input, shape index: {}]   ;;  %s1703_s2 = inlined_call_operand.vmem [shape: bf16[1,256], index: 2, kind: input, shape index: {}]   ;;  %s1704_s3 = inlined_call_operand.hbm [shape: bf16[256,256], index: 3, kind: input, shape index: {}]   ;;  %s1705_s4 = inlined_call_operand.vmem [shape: bf16[1,256], index: 4, kind: input, shape index: {}]   ;;  %s1706_s5 = inlined_call_operand.hbm [shape: bf16[256,128], index: 5, kind: input, shape index: {}]   ;;  %s1707_s6 = inlined_call_operand.vmem [shape: f32[1,128], index: 6, kind: input, shape index: {}]   ;;  %s1708_s7 = inlined_call_operand.hbm [shape: f32[128,128], index: 7, kind: output, shape index: {}]  }
   0x1   :  { %13 = vsyncpa [#allocation6], 0 }
   0x2   :  { %14 = vsyncpa [#allocation4], 0  ;;  %s1410_s24 = smov [#allocation2]   ;;  %s1338_s28 = scalar_lea.hbm %s1704_s3, 4096 }
   0x3   :  { %s26_s25 = sshll.u32 %s1410_s24, 4  ;;  %p1339_p0 = scmp.ne.s32.totalorder %s1704_s3, %s1338_s28  ;;  %s27_s25 = int_to_ptr.vmem [resolvable:$true] %s26_s25 }
   0x4   :  { %p1342_p1 = scmp.lt.u32.totalorder %s1338_s28, %s1704_s3 }
   0x6   :  { %p1344_p2 = pnand %p1342_p1, %p1339_p0 }
   0x8   :  { %1347 = shalt.err (!%p1344_p2)
}
   0x9   :  { %s1348_s10 = scalar_lea.vmem %s27_s25, 4096  ;;  %p1353_p4 = scmp.lt.s32.totalorder %s27_s25, %s27_s25 }
   0xa   :  { %p1349_p3 = scmp.ne.s32.totalorder %s27_s25, %s1348_s10  ;;  %p1354_p5 = scmp.lt.s32.totalorder %s1348_s10, %s1348_s10 }
   0xc   :  { %p1355_p6 = por %p1354_p5, %p1353_p4 }
   0xe   :  { %p1356_p7 = pnand %p1355_p6, %p1349_p3 }
  0x10   :  { %1359 = shalt.err (!%p1356_p7)
}
  0x11   :  { %s1411_s11 = smov 128   ;;  %s1412_s12 = smov 8  }
  0x12   :  { %32 = dma.hbm_to_vmem [thread:$0]  %s1704_s3, 4096, %s27_s25, [#allocation3], %s1411_s11, %s1411_s11, %s1412_s12  }
  0x13   :  { %s1413_s15 = smov [#allocation5]   ;;  %s1360_s19 = scalar_lea.hbm %s1706_s5, 2048 }
  0x14   :  { %s40_s16 = sshll.u32 %s1413_s15, 4  ;;  %p1361_p8 = scmp.ne.s32.totalorder %s1706_s5, %s1360_s19  ;;  %s41_s16 = int_to_ptr.vmem [resolvable:$true] %s40_s16 }
  0x15   :  { %p1364_p9 = scmp.lt.u32.totalorder %s1360_s19, %s1706_s5 }
  0x17   :  { %p1366_p10 = pnand %p1364_p9, %p1361_p8 }
  0x19   :  { %1369 = shalt.err (!%p1366_p10)
}
  0x1a   :  { %s1370_s24 = scalar_lea.vmem %s41_s16, 2048  ;;  %p1375_p12 = scmp.lt.s32.totalorder %s41_s16, %s41_s16 }
  0x1b   :  { %p1371_p11 = scmp.ne.s32.totalorder %s41_s16, %s1370_s24  ;;  %p1376_p13 = scmp.lt.s32.totalorder %s1370_s24, %s1370_s24 }
  0x1d   :  { %p1377_p0 = por %p1376_p13, %p1375_p12 }
  0x1f   :  { %p1378_p1 = pnand %p1377_p0, %p1371_p11 }
  0x21   :  { %1381 = shalt.err (!%p1378_p1)
}
  0x22   :  { %s1414_s3 = smov 64   ;;  %s1415_s25 = smov 4  }
  0x23   :  { %46 = dma.hbm_to_vmem [thread:$0]  %s1706_s5, 2048, %s41_s16, [#allocation6], %s1414_s3, %s1414_s3, %s1415_s25  }
  0x24   :  { %1404 = dma.done.wait [#allocation3], 4096  }
  0x25   :  { %1405 = vsyncadd [#allocation3], 4294963200 }
  0x26   :  { %1406 = dma.done.wait [#allocation6], 2048  }
  0x27   :  { %1407 = vsyncadd [#allocation6], 4294965248  ;;  %v1416_v0 = vmov 0   ;;  %v1228_v1 = vld [vmem:[%s1702_s1 + $0x4] ss:$8 sps:$4 sm:$0xff]   ;;  %vm136_vm0 = vcmask 261120   ;;  %v303_v61 = vlaneseq }
  0x28   :  { %193 = vmatprep.mubr.bf16.mxu0 %v1416_v0  ;;  %v1230_v2 = vld [vmem:[%s1702_s1] ss:$8 sps:$4 sm:$0xff]   ;;  %161 = vmatprep.subr.bf16.mxu0 %v1228_v1  ;;  %v1231_v3 = vld [vmem:[%s1702_s1 + $0x14] ss:$8 sps:$4 sm:$0xff]   ;;  %v1233_v4 = vld [vmem:[%s1702_s1 + $0x10] ss:$8 sps:$4 sm:$0xff]  }
  0x29   :  { %162 = vmatpush1.bf16.msra.mxu0 %v1230_v2  ;;  %v1234_v5 = vld [vmem:[%s1701_s0] sm:$0xff]   ;;  %v1245_v8 = vld [vmem:[#allocation2 + $0x14] ss:$8 sps:$4 sm:$0xff]   ;;  %v1235_v9 = vld [vmem:[%s1701_s0 + $0x8] sm:$0xff]   ;;  %v1417_v59 = vmov 1966171168  }
  0x2a   :  { %163 = vmatprep.subr.bf16.mxu0 %v1231_v3  ;;  %v1242_v6 = vld [vmem:[#allocation2 + $0x4] ss:$8 sps:$4 sm:$0xff]   ;;  %v1244_v7 = vld [vmem:[#allocation2] ss:$8 sps:$4 sm:$0xff]   ;;  %v1247_v10 = vld [vmem:[#allocation2 + $0x10] ss:$8 sps:$4 sm:$0xff]   ;;  %v301_v60 = vunpack.c.l.s4 %v1417_v59 }
  0x2b   :  { %552 = vmatprep.subr.bf16.mxu1 %v1242_v6  ;;  %v1248_v11 = vld [vmem:[#allocation2 + $0x24] ss:$8 sps:$4 sm:$0xff]   ;;  %v1250_v12 = vld [vmem:[#allocation2 + $0x20] ss:$8 sps:$4 sm:$0xff]   ;;  %v1251_v13 = vld [vmem:[#allocation2 + $0x34] ss:$8 sps:$4 sm:$0xff]  }
  0x2c   :  { %553 = vmatpush1.bf16.msra.mxu1 %v1244_v7  ;;  %v1236_v14 = vld [vmem:[%s1701_s0 + $0x10] sm:$0xff]   ;;  %v1254_v16 = vld [vmem:[#allocation2 + $0x44] ss:$8 sps:$4 sm:$0xff]   ;;  %v1256_v17 = vld [vmem:[#allocation2 + $0x40] ss:$8 sps:$4 sm:$0xff]   ;;  %v302_v62 = vunpack.c.0.s8 %v301_v60  ;;  %v304_v63 = vshrl.u32 %v303_v61, 7 }
  0x2d   :  { %164 = vmatpush1.bf16.msra.mxu0 %v1233_v4  ;;  %554 = vmatprep.subr.bf16.mxu1 %v1245_v8  ;;  %v1253_v15 = vld [vmem:[#allocation2 + $0x30] ss:$8 sps:$4 sm:$0xff]   ;;  %v1257_v18 = vld [vmem:[#allocation2 + $0x54] ss:$8 sps:$4 sm:$0xff]   ;;  %v1260_v21 = vld [vmem:[#allocation2 + $0x64] ss:$8 sps:$4 sm:$0xff]  }
  0x2e   :  { %v1237_v19 = vld [vmem:[%s1701_s0 + $0x18] sm:$0xff]   ;;  %v1262_v22 = vld [vmem:[#allocation2 + $0x60] ss:$8 sps:$4 sm:$0xff]   ;;  %v1266_v26 = vld [vmem:[#allocation2 + $0x84] ss:$8 sps:$4 sm:$0xff]   ;;  %v1542_v2 = vsub.s32 %v302_v62, %v304_v63  ;;  %v1546_v7 = vsub.s32 0, %v304_v63 }
  0x2f   :  { %v1259_v20 = vld [vmem:[#allocation2 + $0x50] ss:$8 sps:$4 sm:$0xff]   ;;  %v1263_v23 = vld [vmem:[#allocation2 + $0x74] ss:$8 sps:$4 sm:$0xff]   ;;  %v1238_v24 = vld [vmem:[%s1701_s0 + $0x20] sm:$0xff]  }
  0x30   :  { %1096 = vmatmul.mubr.msk.bf16.vlgmr.msra.gmra.mrb[0].mxu0 %vm136_vm0, %v1234_v5  ;;  %555 = vmatpush1.bf16.msra.mxu1 %v1247_v10  ;;  %v1265_v25 = vld [vmem:[#allocation2 + $0x70] ss:$8 sps:$4 sm:$0xff]   ;;  %v1268_v27 = vld [vmem:[#allocation2 + $0x80] ss:$8 sps:$4 sm:$0xff]   ;;  %v1269_v28 = vld [vmem:[#allocation2 + $0x94] ss:$8 sps:$4 sm:$0xff]  }
  0x31   :  { %203 = vmatprep.mubr.bf16.mxu0 %v1416_v0  ;;  %556 = vmatprep.subr.bf16.mxu1 %v1248_v11  ;;  %v1239_v29 = vld [vmem:[%s1701_s0 + $0x28] sm:$0xff]   ;;  %v1271_v30 = vld [vmem:[#allocation2 + $0x90] ss:$8 sps:$4 sm:$0xff]   ;;  %v1275_v33 = vld [vmem:[#allocation2 + $0xb4] ss:$8 sps:$4 sm:$0xff]  }
  0x32   :  { %v1272_v31 = vld [vmem:[#allocation2 + $0xa4] ss:$8 sps:$4 sm:$0xff]   ;;  %v1274_v32 = vld [vmem:[#allocation2 + $0xa0] ss:$8 sps:$4 sm:$0xff]   ;;  %v1240_v34 = vld [vmem:[%s1701_s0 + $0x30] sm:$0xff]  }
  0x33   :  { %v1277_v35 = vld [vmem:[#allocation2 + $0xb0] ss:$8 sps:$4 sm:$0xff]   ;;  %v1278_v36 = vld [vmem:[#allocation2 + $0xc4] ss:$8 sps:$4 sm:$0xff]   ;;  %v1280_v37 = vld [vmem:[#allocation2 + $0xc0] ss:$8 sps:$4 sm:$0xff]  }
  0x34   :  { %557 = vmatpush1.bf16.msra.mxu1 %v1250_v12  ;;  %v1281_v38 = vld [vmem:[#allocation2 + $0xd4] ss:$8 sps:$4 sm:$0xff]   ;;  %v1283_v40 = vld [vmem:[#allocation2 + $0xd0] ss:$8 sps:$4 sm:$0xff]   ;;  %v1284_v41 = vld [vmem:[#allocation2 + $0xe4] ss:$8 sps:$4 sm:$0xff]  }
  0x35   :  { %558 = vmatprep.subr.bf16.mxu1 %v1251_v13  ;;  %v1241_v39 = vld [vmem:[%s1701_s0 + $0x38] sm:$0xff]   ;;  %v1286_v42 = vld [vmem:[#allocation2 + $0xe0] ss:$8 sps:$4 sm:$0xff]   ;;  %v1294_v49 = vld [vmem:[#allocation5 + $0x50] sm:$0xff]  }
  0x36   :  { %v1287_v43 = vld [vmem:[#allocation2 + $0xf4] ss:$8 sps:$4 sm:$0xff]   ;;  %v1289_v44 = vld [vmem:[#allocation2 + $0xf0] ss:$8 sps:$4 sm:$0xff]   ;;  %v1290_v45 = vld [vmem:[#allocation5 + $0x40] sm:$0xff]  }
  0x37   :  { %v1291_v46 = vld [vmem:[#allocation5] sm:$0xff]   ;;  %v1292_v47 = vld [vmem:[#allocation5 + $0x48] sm:$0xff]   ;;  %1155 = vmatprep.subr.bf16.mxu0 %v1290_v45  ;;  %v1295_v50 = vld [vmem:[#allocation5 + $0x10] sm:$0xff]  }
  0x38   :  { %1097 = vmatmul.mubr.msk.bf16.gmra.mrb[4].mxu0 %vm136_vm0, %v1235_v9  ;;  %559 = vmatpush1.bf16.msra.mxu1 %v1253_v15  ;;  %v1293_v48 = vld [vmem:[#allocation5 + $0x8] sm:$0xff]   ;;  %v1296_v51 = vld [vmem:[#allocation5 + $0x58] sm:$0xff]   ;;  %v1298_v53 = vld [vmem:[#allocation5 + $0x60] sm:$0xff]  }
  0x39   :  { %213 = vmatprep.mubr.bf16.mxu0 %v1416_v0  ;;  %560 = vmatprep.subr.bf16.mxu1 %v1254_v16  ;;  %v1297_v52 = vld [vmem:[#allocation5 + $0x18] sm:$0xff]   ;;  %v1299_v54 = vld [vmem:[#allocation5 + $0x20] sm:$0xff]   ;;  %v1300_v55 = vld [vmem:[#allocation5 + $0x68] sm:$0xff]  }
  0x3a   :  { %1156 = vmatpush3.bf16.msra.mxu0 %v1291_v46  ;;  %v1301_v56 = vld [vmem:[#allocation5 + $0x28] sm:$0xff]   ;;  %v1302_v57 = vld [vmem:[#allocation5 + $0x70] sm:$0xff]   ;;  %v1104_v1 = vld.sshfl [vmem:[%s1703_s2] sm:$0x11 pattern:$0x75316420] }
  0x3b   :  { %1157 = vmatprep.subr.bf16.mxu0 %v1292_v47  ;;  %v1303_v58 = vld [vmem:[#allocation5 + $0x30] sm:$0xff]   ;;  %v299_v3 = vcombine.high %v1104_v1, %v1104_v1  ;;  %v306_v4 = vrot.slane %v1104_v1, %v1542_v2 }
  0x3c   :  { %561 = vmatpush1.bf16.msra.mxu1 %v1256_v17 }
  0x3d   :  { %562 = vmatprep.subr.bf16.mxu1 %v1257_v18  ;;  %v313_v5 = vrot.slane %v299_v3, %v1542_v2  ;;  %v315_v6 = vpack.i.b16 %v306_v4, %v306_v4 }
  0x3e   :  { %1158 = vmatpush3.bf16.msra.mxu0 %v1293_v48 }
  0x3f   :  { %1159 = vmatprep.subr.bf16.mxu0 %v1294_v49  ;;  %v322_v8 = vpack.i.b16 %v313_v5, %v313_v5  ;;  %v1549_v11 = vrot.slane %v315_v6, %v1546_v7 }
  0x40   :  { %1098 = vmatmul.mubr.msk.bf16.gmra.mrb[8].mxu0 %vm136_vm0, %v1236_v14  ;;  %563 = vmatpush1.bf16.msra.mxu1 %v1259_v20 }
  0x41   :  { %223 = vmatprep.mubr.bf16.mxu0 %v1416_v0  ;;  %564 = vmatprep.subr.bf16.mxu1 %v1260_v21  ;;  %v1552_v13 = vrot.slane %v322_v8, %v1546_v7 }
  0x42   :  { %1160 = vmatpush3.bf16.msra.mxu0 %v1295_v50 }
  0x43   :  { %1161 = vmatprep.subr.bf16.mxu0 %v1296_v51 }
  0x44   :  { %565 = vmatpush1.bf16.msra.mxu1 %v1262_v22 }
  0x45   :  { %566 = vmatprep.subr.bf16.mxu1 %v1263_v23 }
  0x46   :  { %1162 = vmatpush3.bf16.msra.mxu0 %v1297_v52 }
  0x47   :  { %1163 = vmatprep.subr.bf16.mxu0 %v1298_v53 }
  0x48   :  { %1099 = vmatmul.mubr.msk.bf16.gmra.mrb[12].mxu0 %vm136_vm0, %v1237_v19  ;;  %567 = vmatpush1.bf16.msra.mxu1 %v1265_v25 }
  0x49   :  { %233 = vmatprep.mubr.bf16.mxu0 %v1416_v0  ;;  %568 = vmatprep.subr.bf16.mxu1 %v1266_v26 }
  0x4a   :  { %1164 = vmatpush3.bf16.msra.mxu0 %v1299_v54 }
  0x4b   :  { %1165 = vmatprep.subr.bf16.mxu0 %v1300_v55 }
  0x4c   :  { %569 = vmatpush1.bf16.msra.mxu1 %v1268_v27 }
  0x4d   :  { %570 = vmatprep.subr.bf16.mxu1 %v1269_v28 }
  0x4e   :  { %1166 = vmatpush3.bf16.msra.mxu0 %v1301_v56 }
  0x4f   :  { %1167 = vmatprep.subr.bf16.mxu0 %v1302_v57 }
  0x50   :  { %1100 = vmatmul.mubr.msk.bf16.gmra.mrb[16].mxu0 %vm136_vm0, %v1238_v24  ;;  %571 = vmatpush1.bf16.msra.mxu1 %v1271_v30 }
  0x51   :  { %243 = vmatprep.mubr.bf16.mxu0 %v1416_v0  ;;  %572 = vmatprep.subr.bf16.mxu1 %v1272_v31 }
  0x52   :  { %1168 = vmatpush3.bf16.msra.mxu0 %v1303_v58 }
  0x54   :  { %573 = vmatpush1.bf16.msra.mxu1 %v1274_v32 }
  0x55   :  { %574 = vmatprep.subr.bf16.mxu1 %v1275_v33 }
  0x58   :  { %1101 = vmatmul.mubr.msk.bf16.gmra.mrb[20].mxu0 %vm136_vm0, %v1239_v29  ;;  %575 = vmatpush1.bf16.msra.mxu1 %v1277_v35 }
  0x59   :  { %253 = vmatprep.mubr.bf16.mxu0 %v1416_v0  ;;  %576 = vmatprep.subr.bf16.mxu1 %v1278_v36 }
  0x5c   :  { %577 = vmatpush1.bf16.msra.mxu1 %v1280_v37 }
  0x5d   :  { %578 = vmatprep.subr.bf16.mxu1 %v1281_v38 }
  0x60   :  { %1102 = vmatmul.mubr.msk.bf16.gmra.mrb[24].mxu0 %vm136_vm0, %v1240_v34  ;;  %579 = vmatpush1.bf16.msra.mxu1 %v1283_v40 }
  0x61   :  { %263 = vmatprep.mubr.bf16.mxu0 %v1416_v0  ;;  %580 = vmatprep.subr.bf16.mxu1 %v1284_v41 }
  0x64   :  { %581 = vmatpush1.bf16.msra.mxu1 %v1286_v42 }
  0x65   :  { %582 = vmatprep.subr.bf16.mxu1 %v1287_v43 }
  0x68   :  { %1103 = vmatmul.mubr.msk.bf16.gmra.mrb[28].mxu0 %vm136_vm0, %v1241_v39  ;;  %583 = vmatpush1.bf16.msra.mxu1 %v1289_v44 }
 0x103   :  { %v195_v9 = vpop.f32.mrb[0].mxu0 }
 0x104   :  { %v197_v10 = vpop.f32.mrb[1].mxu0 }
 0x105   :  { %v199_v12 = vpop.f32.mrb[2].mxu0 }
 0x106   :  { %v274_v14 = vpack.c.bf16 %v199_v12, %v195_v9  ;;  %v201_v15 = vpop.f32.mrb[3].mxu0 }
 0x107   :  { %v275_v16 = vpack.c.bf16 %v201_v15, %v197_v10 }
 0x108   :  { %v328_v17 = vadd.bf16 %v1549_v11, %v274_v14 }
 0x109   :  { %v329_v18 = vadd.bf16 %v1552_v13, %v275_v16 }
 0x10a   :  { %v344_v22 = vmax.bf16 %v1416_v0, %v328_v17 }
 0x10b   :  { %v205_v19 = vpop.f32.mrb[4].mxu0  ;;  %v345_v20 = vmax.bf16 %v1416_v0, %v329_v18 }
 0x10c   :  { %v207_v21 = vpop.f32.mrb[5].mxu0 }
 0x10d   :  { %v209_v23 = vpop.f32.mrb[6].mxu0  ;;  %584 = vmatprep.mubr.bf16.mxu1 %v345_v20 }
 0x10e   :  { %v276_v24 = vpack.c.bf16 %v209_v23, %v205_v19  ;;  %v211_v25 = vpop.f32.mrb[7].mxu0  ;;  %585 = vmatmul.mubr.bf16.vlgmr.msra.gmra.mrb[0].mxu1 %v344_v22 }
 0x10f   :  { %v277_v26 = vpack.c.bf16 %v211_v25, %v207_v21 }
 0x110   :  { %v330_v27 = vadd.bf16 %v1549_v11, %v276_v24 }
 0x111   :  { %v331_v28 = vadd.bf16 %v1552_v13, %v277_v26 }
 0x112   :  { %v346_v32 = vmax.bf16 %v1416_v0, %v330_v27 }
 0x113   :  { %v215_v29 = vpop.f32.mrb[8].mxu0  ;;  %v347_v30 = vmax.bf16 %v1416_v0, %v331_v28 }
 0x114   :  { %v217_v31 = vpop.f32.mrb[9].mxu0 }
 0x115   :  { %v219_v33 = vpop.f32.mrb[10].mxu0  ;;  %594 = vmatprep.mubr.bf16.mxu1 %v347_v30 }
 0x116   :  { %v278_v34 = vpack.c.bf16 %v219_v33, %v215_v29  ;;  %v221_v35 = vpop.f32.mrb[11].mxu0  ;;  %595 = vmatmul.mubr.bf16.gmra.mrb[4].mxu1 %v346_v32  ;;  %v1304_v33 = vld [vmem:[#allocation5 + $0x78] sm:$0xff]  }
 0x117   :  { %v279_v36 = vpack.c.bf16 %v221_v35, %v217_v31  ;;  %1169 = vmatprep.subr.bf16.mxu0 %v1304_v33  ;;  %v1137_v35 = vld.sshfl [vmem:[%s1705_s4] sm:$0x11 pattern:$0x75316420] }
 0x118   :  { %v332_v37 = vadd.bf16 %v1549_v11, %v278_v34  ;;  %v1305_v34 = vld [vmem:[#allocation5 + $0x38] sm:$0xff]  }
 0x119   :  { %v333_v38 = vadd.bf16 %v1552_v13, %v279_v36  ;;  %1170 = vmatpush3.bf16.msra.mxu0 %v1305_v34  ;;  %v690_v36 = vcombine.high %v1137_v35, %v1137_v35 }
 0x11a   :  { %v348_v42 = vmax.bf16 %v1416_v0, %v332_v37  ;;  %v697_v37 = vrot.slane %v1137_v35, %v1542_v2 }
 0x11b   :  { %v225_v39 = vpop.f32.mrb[12].mxu0  ;;  %v349_v40 = vmax.bf16 %v1416_v0, %v333_v38 }
 0x11c   :  { %v227_v41 = vpop.f32.mrb[13].mxu0 }
 0x11d   :  { %v229_v43 = vpop.f32.mrb[14].mxu0  ;;  %604 = vmatprep.mubr.bf16.mxu1 %v349_v40 }
 0x11e   :  { %v280_v44 = vpack.c.bf16 %v229_v43, %v225_v39  ;;  %v231_v45 = vpop.f32.mrb[15].mxu0  ;;  %605 = vmatmul.mubr.bf16.gmra.mrb[8].mxu1 %v348_v42 }
 0x11f   :  { %v281_v46 = vpack.c.bf16 %v231_v45, %v227_v41 }
 0x120   :  { %v334_v47 = vadd.bf16 %v1549_v11, %v280_v44 }
 0x121   :  { %v335_v48 = vadd.bf16 %v1552_v13, %v281_v46 }
 0x122   :  { %v350_v52 = vmax.bf16 %v1416_v0, %v334_v47 }
 0x123   :  { %v235_v49 = vpop.f32.mrb[16].mxu0  ;;  %v351_v50 = vmax.bf16 %v1416_v0, %v335_v48 }
 0x124   :  { %v237_v51 = vpop.f32.mrb[17].mxu0 }
 0x125   :  { %v239_v53 = vpop.f32.mrb[18].mxu0  ;;  %614 = vmatprep.mubr.bf16.mxu1 %v351_v50 }
 0x126   :  { %v282_v54 = vpack.c.bf16 %v239_v53, %v235_v49  ;;  %v241_v55 = vpop.f32.mrb[19].mxu0  ;;  %615 = vmatmul.mubr.bf16.gmra.mrb[12].mxu1 %v350_v52 }
 0x127   :  { %v283_v56 = vpack.c.bf16 %v241_v55, %v237_v51 }
 0x128   :  { %v336_v57 = vadd.bf16 %v1549_v11, %v282_v54 }
 0x129   :  { %v337_v58 = vadd.bf16 %v1552_v13, %v283_v56 }
 0x12a   :  { %v352_v63 = vmax.bf16 %v1416_v0, %v336_v57 }
 0x12b   :  { %v245_v59 = vpop.f32.mrb[20].mxu0  ;;  %v353_v60 = vmax.bf16 %v1416_v0, %v337_v58 }
 0x12c   :  { %v247_v62 = vpop.f32.mrb[21].mxu0 }
 0x12d   :  { %v249_v1 = vpop.f32.mrb[22].mxu0  ;;  %624 = vmatprep.mubr.bf16.mxu1 %v353_v60 }
 0x12e   :  { %v284_v3 = vpack.c.bf16 %v249_v1, %v245_v59  ;;  %v251_v4 = vpop.f32.mrb[23].mxu0  ;;  %625 = vmatmul.mubr.bf16.gmra.mrb[16].mxu1 %v352_v63 }
 0x12f   :  { %v285_v5 = vpack.c.bf16 %v251_v4, %v247_v62 }
 0x130   :  { %v338_v6 = vadd.bf16 %v1549_v11, %v284_v3 }
 0x131   :  { %v339_v8 = vadd.bf16 %v1552_v13, %v285_v5 }
 0x132   :  { %v354_v14 = vmax.bf16 %v1416_v0, %v338_v6 }
 0x133   :  { %v255_v9 = vpop.f32.mrb[24].mxu0  ;;  %v355_v10 = vmax.bf16 %v1416_v0, %v339_v8 }
 0x134   :  { %v257_v12 = vpop.f32.mrb[25].mxu0 }
 0x135   :  { %v259_v15 = vpop.f32.mrb[26].mxu0  ;;  %634 = vmatprep.mubr.bf16.mxu1 %v355_v10 }
 0x136   :  { %v286_v16 = vpack.c.bf16 %v259_v15, %v255_v9  ;;  %v261_v17 = vpop.f32.mrb[27].mxu0  ;;  %635 = vmatmul.mubr.bf16.gmra.mrb[20].mxu1 %v354_v14 }
 0x137   :  { %v287_v18 = vpack.c.bf16 %v261_v17, %v257_v12 }
 0x138   :  { %v340_v19 = vadd.bf16 %v1549_v11, %v286_v16 }
 0x139   :  { %v341_v20 = vadd.bf16 %v1552_v13, %v287_v18 }
 0x13a   :  { %v356_v24 = vmax.bf16 %v1416_v0, %v340_v19 }
 0x13b   :  { %v265_v21 = vpop.f32.mrb[28].mxu0  ;;  %v357_v22 = vmax.bf16 %v1416_v0, %v341_v20 }
 0x13c   :  { %v267_v23 = vpop.f32.mrb[29].mxu0 }
 0x13d   :  { %v269_v25 = vpop.f32.mrb[30].mxu0  ;;  %644 = vmatprep.mubr.bf16.mxu1 %v357_v22 }
 0x13e   :  { %v288_v26 = vpack.c.bf16 %v269_v25, %v265_v21  ;;  %v271_v27 = vpop.f32.mrb[31].mxu0  ;;  %645 = vmatmul.mubr.bf16.gmra.mrb[24].mxu1 %v356_v24 }
 0x13f   :  { %v289_v28 = vpack.c.bf16 %v271_v27, %v267_v23 }
 0x140   :  { %v342_v29 = vadd.bf16 %v1549_v11, %v288_v26  ;;  %v704_v11 = vrot.slane %v690_v36, %v1542_v2 }
 0x141   :  { %v343_v30 = vadd.bf16 %v1552_v13, %v289_v28  ;;  %v706_v13 = vpack.i.b16 %v697_v37, %v697_v37 }
 0x142   :  { %v358_v32 = vmax.bf16 %v1416_v0, %v342_v29  ;;  %v713_v38 = vpack.i.b16 %v704_v11, %v704_v11 }
 0x143   :  { %v359_v31 = vmax.bf16 %v1416_v0, %v343_v30  ;;  %v1592_v41 = vrot.slane %v706_v13, %v1546_v7 }
 0x144   :  { %v1595_v43 = vrot.slane %v713_v38, %v1546_v7 }
 0x145   :  { %654 = vmatprep.mubr.bf16.mxu1 %v359_v31 }
 0x146   :  { %655 = vmatmul.mubr.bf16.gmra.mrb[28].mxu1 %v358_v32 }
 0x1e1   :  { %v586_v39 = vpop.f32.mrb[0].mxu1 }
 0x1e2   :  { %v588_v40 = vpop.f32.mrb[1].mxu1 }
 0x1e3   :  { %v590_v42 = vpop.f32.mrb[2].mxu1 }
 0x1e4   :  { %v665_v44 = vpack.c.bf16 %v590_v42, %v586_v39  ;;  %v592_v45 = vpop.f32.mrb[3].mxu1 }
 0x1e5   :  { %v666_v46 = vpack.c.bf16 %v592_v45, %v588_v40 }
 0x1e6   :  { %v719_v47 = vadd.bf16 %v1592_v41, %v665_v44 }
 0x1e7   :  { %v720_v48 = vadd.bf16 %v1595_v43, %v666_v46 }
 0x1e8   :  { %v735_v50 = vmax.bf16 %v1416_v0, %v719_v47 }
 0x1e9   :  { %v596_v49 = vpop.f32.mrb[4].mxu1  ;;  %v736_v2 = vmax.bf16 %v1416_v0, %v720_v48 }
 0x1ea   :  { %v598_v51 = vpop.f32.mrb[5].mxu1 }
 0x1eb   :  { %v600_v52 = vpop.f32.mrb[6].mxu1  ;;  %918 = vmatprep.mubr.bf16.mxu0 %v736_v2 }
 0x1ec   :  { %v667_v53 = vpack.c.bf16 %v600_v52, %v596_v49  ;;  %v602_v54 = vpop.f32.mrb[7].mxu1  ;;  %919 = vmatmul.mubr.bf16.vlgmr.msra.gmra.mrb[32].mxu0 %v735_v50 }
 0x1ed   :  { %v668_v7 = vpack.c.bf16 %v602_v54, %v598_v51 }
 0x1ee   :  { %v721_v55 = vadd.bf16 %v1592_v41, %v667_v53 }
 0x1ef   :  { %v722_v56 = vadd.bf16 %v1595_v43, %v668_v7 }
 0x1f0   :  { %v737_v60 = vmax.bf16 %v1416_v0, %v721_v55 }
 0x1f1   :  { %v606_v57 = vpop.f32.mrb[8].mxu1  ;;  %v738_v58 = vmax.bf16 %v1416_v0, %v722_v56 }
 0x1f2   :  { %v608_v59 = vpop.f32.mrb[9].mxu1 }
 0x1f3   :  { %v610_v62 = vpop.f32.mrb[10].mxu1  ;;  %926 = vmatprep.mubr.bf16.mxu0 %v738_v58 }
 0x1f4   :  { %v669_v63 = vpack.c.bf16 %v610_v62, %v606_v57  ;;  %v612_v1 = vpop.f32.mrb[11].mxu1  ;;  %927 = vmatmul.mubr.bf16.gmra.mrb[36].mxu0 %v737_v60  ;;  %v1632_v60 = vld [vmem:[%s1707_s6] ss:$0 sm:$0xff]  ;;  %s1418_s6 = smov [#allocation7]  }
 0x1f5   :  { %v670_v3 = vpack.c.bf16 %v612_v1, %v608_v59  ;;  %s1071_s8 = sshll.u32 %s1418_s6, 4  ;;  %s1072_s8 = int_to_ptr.vmem [resolvable:$true] %s1071_s8 }
 0x1f6   :  { %v723_v4 = vadd.bf16 %v1592_v41, %v669_v63  ;;  %s1382_s9 = scalar_lea.vmem %s1072_s8, 2048  ;;  %p1387_p3 = scmp.lt.s32.totalorder %s1072_s8, %s1072_s8 }
 0x1f7   :  { %v724_v5 = vadd.bf16 %v1595_v43, %v670_v3  ;;  %p1383_p2 = scmp.ne.s32.totalorder %s1072_s8, %s1382_s9  ;;  %p1388_p4 = scmp.lt.s32.totalorder %s1382_s9, %s1382_s9 }
 0x1f8   :  { %v739_v10 = vmax.bf16 %v1416_v0, %v723_v4 }
 0x1f9   :  { %v616_v6 = vpop.f32.mrb[12].mxu1  ;;  %v740_v8 = vmax.bf16 %v1416_v0, %v724_v5  ;;  %p1389_p5 = por %p1388_p4, %p1387_p3 }
 0x1fa   :  { %v618_v9 = vpop.f32.mrb[13].mxu1 }
 0x1fb   :  { %v620_v12 = vpop.f32.mrb[14].mxu1  ;;  %934 = vmatprep.mubr.bf16.mxu0 %v740_v8  ;;  %p1390_p6 = pnand %p1389_p5, %p1383_p2 }
 0x1fc   :  { %v671_v14 = vpack.c.bf16 %v620_v12, %v616_v6  ;;  %v622_v15 = vpop.f32.mrb[15].mxu1  ;;  %935 = vmatmul.mubr.bf16.gmra.mrb[40].mxu0 %v739_v10 }
 0x1fd   :  { %v672_v16 = vpack.c.bf16 %v622_v15, %v618_v9 }
 0x1fe   :  { %v725_v17 = vadd.bf16 %v1592_v41, %v671_v14  ;;  %v1638_v14 = vand.u32 127, %v303_v61 }
 0x1ff   :  { %v726_v18 = vadd.bf16 %v1595_v43, %v672_v16 }
 0x200   :  { %v741_v22 = vmax.bf16 %v1416_v0, %v725_v17  ;;  %vm1033_vm1 = vcmp.ge.s32.totalorder %v1638_v14, 4 }
 0x201   :  { %v626_v19 = vpop.f32.mrb[16].mxu1  ;;  %v742_v20 = vmax.bf16 %v1416_v0, %v726_v18 }
 0x202   :  { %v628_v21 = vpop.f32.mrb[17].mxu1 }
 0x203   :  { %v630_v23 = vpop.f32.mrb[18].mxu1  ;;  %942 = vmatprep.mubr.bf16.mxu0 %v742_v20 }
 0x204   :  { %v673_v24 = vpack.c.bf16 %v630_v23, %v626_v19  ;;  %v632_v25 = vpop.f32.mrb[19].mxu1  ;;  %943 = vmatmul.mubr.bf16.gmra.mrb[44].mxu0 %v741_v22 }
 0x205   :  { %v674_v26 = vpack.c.bf16 %v632_v25, %v628_v21 }
 0x206   :  { %v727_v27 = vadd.bf16 %v1592_v41, %v673_v24 }
 0x207   :  { %v728_v28 = vadd.bf16 %v1595_v43, %v674_v26 }
 0x208   :  { %v743_v32 = vmax.bf16 %v1416_v0, %v727_v27 }
 0x209   :  { %v636_v29 = vpop.f32.mrb[20].mxu1  ;;  %v744_v30 = vmax.bf16 %v1416_v0, %v728_v28 }
 0x20a   :  { %v638_v31 = vpop.f32.mrb[21].mxu1 }
 0x20b   :  { %v640_v33 = vpop.f32.mrb[22].mxu1  ;;  %950 = vmatprep.mubr.bf16.mxu0 %v744_v30 }
 0x20c   :  { %v675_v34 = vpack.c.bf16 %v640_v33, %v636_v29  ;;  %v642_v35 = vpop.f32.mrb[23].mxu1  ;;  %951 = vmatmul.mubr.bf16.gmra.mrb[48].mxu0 %v743_v32 }
 0x20d   :  { %v676_v36 = vpack.c.bf16 %v642_v35, %v638_v31 }
 0x20e   :  { %v729_v37 = vadd.bf16 %v1592_v41, %v675_v34 }
 0x20f   :  { %v730_v11 = vadd.bf16 %v1595_v43, %v676_v36 }
 0x210   :  { %v745_v40 = vmax.bf16 %v1416_v0, %v729_v37 }
 0x211   :  { %v646_v13 = vpop.f32.mrb[24].mxu1  ;;  %v746_v38 = vmax.bf16 %v1416_v0, %v730_v11 }
 0x212   :  { %v648_v39 = vpop.f32.mrb[25].mxu1 }
 0x213   :  { %v650_v42 = vpop.f32.mrb[26].mxu1  ;;  %958 = vmatprep.mubr.bf16.mxu0 %v746_v38 }
 0x214   :  { %v677_v44 = vpack.c.bf16 %v650_v42, %v646_v13  ;;  %v652_v45 = vpop.f32.mrb[27].mxu1  ;;  %959 = vmatmul.mubr.bf16.gmra.mrb[52].mxu0 %v745_v40 }
 0x215   :  { %v678_v46 = vpack.c.bf16 %v652_v45, %v648_v39 }
 0x216   :  { %v731_v47 = vadd.bf16 %v1592_v41, %v677_v44 }
 0x217   :  { %v732_v48 = vadd.bf16 %v1595_v43, %v678_v46 }
 0x218   :  { %v747_v51 = vmax.bf16 %v1416_v0, %v731_v47 }
 0x219   :  { %v656_v49 = vpop.f32.mrb[28].mxu1  ;;  %v748_v2 = vmax.bf16 %v1416_v0, %v732_v48 }
 0x21a   :  { %v658_v50 = vpop.f32.mrb[29].mxu1 }
 0x21b   :  { %v660_v52 = vpop.f32.mrb[30].mxu1  ;;  %966 = vmatprep.mubr.bf16.mxu0 %v748_v2 }
 0x21c   :  { %v679_v53 = vpack.c.bf16 %v660_v52, %v656_v49  ;;  %v662_v54 = vpop.f32.mrb[31].mxu1  ;;  %967 = vmatmul.mubr.bf16.gmra.mrb[56].mxu0 %v747_v51 }
 0x21d   :  { %v680_v7 = vpack.c.bf16 %v662_v54, %v658_v50 }
 0x21e   :  { %v733_v55 = vadd.bf16 %v1592_v41, %v679_v53 }
 0x21f   :  { %v734_v56 = vadd.bf16 %v1595_v43, %v680_v7 }
 0x220   :  { %v749_v58 = vmax.bf16 %v1416_v0, %v733_v55 }
 0x221   :  { %v750_v57 = vmax.bf16 %v1416_v0, %v734_v56 }
 0x223   :  { %974 = vmatprep.mubr.bf16.mxu0 %v750_v57 }
 0x224   :  { %975 = vmatmul.mubr.bf16.gmra.mrb[60].mxu0 %v749_v58 }
 0x2bf   :  { %v1171_v59 = vpop.f32.mrb[32].mxu0 }
 0x2c0   :  { %v1172_v62 = vpop.f32.mrb[33].mxu0 }
 0x2c1   :  { %v1173_v63 = vadd.f32 %v1172_v62, %v1171_v59  ;;  %v1174_v1 = vpop.f32.mrb[34].mxu0 }
 0x2c2   :  { %v1175_v3 = vpop.f32.mrb[35].mxu0 }
 0x2c3   :  { %v921_v41 = vadd.f32 %v1173_v63, %v1632_v60  ;;  %v1176_v4 = vadd.f32 %v1175_v3, %v1174_v1 }
 0x2c5   :  { %1306 = vtanh.f32 %v921_v41  ;;  %v924_v43 = vadd.f32 %v1176_v4, %v1632_v60 }
 0x2c7   :  { %1308 = vtanh.f32 %v924_v43  ;;  %v1177_v0 = vpop.f32.mrb[36].mxu0 }
 0x2c8   :  { %v1178_v5 = vpop.f32.mrb[37].mxu0 }
 0x2c9   :  { %v1179_v6 = vadd.f32 %v1178_v5, %v1177_v0  ;;  %v1180_v8 = vpop.f32.mrb[38].mxu0 }
 0x2ca   :  { %v1181_v9 = vpop.f32.mrb[39].mxu0 }
 0x2cb   :  { %v929_v10 = vadd.f32 %v1179_v6, %v1632_v60  ;;  %v1182_v12 = vadd.f32 %v1181_v9, %v1180_v8 }
 0x2cd   :  { %1310 = vtanh.f32 %v929_v10  ;;  %v932_v15 = vadd.f32 %v1182_v12, %v1632_v60 }
 0x2cf   :  { %v1307_v16 = vpop.eup %1306  ;;  %1312 = vtanh.f32 %v932_v15  ;;  %v1183_v17 = vpop.f32.mrb[40].mxu0 }
 0x2d0   :  { %v999_v18 = vmul.f32 3.5, %v1307_v16  ;;  %v1184_v19 = vpop.f32.mrb[41].mxu0 }
 0x2d1   :  { %v1309_v20 = vpop.eup %1308  ;;  %v1185_v21 = vadd.f32 %v1184_v19, %v1183_v17  ;;  %v1186_v22 = vpop.f32.mrb[42].mxu0 }
 0x2d2   :  { %v1015_v23 = vadd.f32 -1.5, %v999_v18  ;;  %v1000_v24 = vmul.f32 3.5, %v1309_v20  ;;  %v1187_v25 = vpop.f32.mrb[43].mxu0 }
 0x2d3   :  { %v937_v26 = vadd.f32 %v1185_v21, %v1632_v60  ;;  %v1188_v61 = vadd.f32 %v1187_v25, %v1186_v22 }
 0x2d4   :  { %v1034_v27 = vsel %vm1033_vm1, %v1015_v23, %v921_v41  ;;  %v1016_v28 = vadd.f32 -1.5, %v1000_v24 }
 0x2d5   :  { %1050 = vst [vmem:[#allocation7] sm:$0xff] %v1034_v27  ;;  %1314 = vtanh.f32 %v937_v26  ;;  %v940_v29 = vadd.f32 %v1188_v61, %v1632_v60 }
 0x2d6   :  { %v1035_v30 = vsel %vm1033_vm1, %v1016_v28, %v924_v43 }
 0x2d7   :  { %v1311_v31 = vpop.eup %1310  ;;  %1051 = vst [vmem:[#allocation7 + $0x8] sm:$0xff] %v1035_v30  ;;  %1316 = vtanh.f32 %v940_v29  ;;  %v1189_v32 = vpop.f32.mrb[44].mxu0 }
 0x2d8   :  { %v1001_v33 = vmul.f32 3.5, %v1311_v31  ;;  %v1190_v34 = vpop.f32.mrb[45].mxu0 }
 0x2d9   :  { %v1313_v35 = vpop.eup %1312  ;;  %v1191_v36 = vadd.f32 %v1190_v34, %v1189_v32  ;;  %v1192_v37 = vpop.f32.mrb[46].mxu0 }
 0x2da   :  { %v1017_v11 = vadd.f32 -1.5, %v1001_v33  ;;  %v1002_v13 = vmul.f32 3.5, %v1313_v35  ;;  %v1193_v38 = vpop.f32.mrb[47].mxu0 }
 0x2db   :  { %v945_v39 = vadd.f32 %v1191_v36, %v1632_v60  ;;  %v1194_v40 = vadd.f32 %v1193_v38, %v1192_v37 }
 0x2dc   :  { %v1036_v42 = vsel %vm1033_vm1, %v1017_v11, %v929_v10  ;;  %v1018_v44 = vadd.f32 -1.5, %v1002_v13 }
 0x2dd   :  { %1052 = vst [vmem:[#allocation7 + $0x10] sm:$0xff] %v1036_v42  ;;  %1318 = vtanh.f32 %v945_v39  ;;  %v948_v45 = vadd.f32 %v1194_v40, %v1632_v60 }
 0x2de   :  { %v1037_v46 = vsel %vm1033_vm1, %v1018_v44, %v932_v15 }
 0x2df   :  { %v1315_v47 = vpop.eup %1314  ;;  %1053 = vst [vmem:[#allocation7 + $0x18] sm:$0xff] %v1037_v46  ;;  %1320 = vtanh.f32 %v948_v45  ;;  %v1195_v48 = vpop.f32.mrb[48].mxu0 }
 0x2e0   :  { %v1003_v49 = vmul.f32 3.5, %v1315_v47  ;;  %v1196_v2 = vpop.f32.mrb[49].mxu0 }
 0x2e1   :  { %v1317_v50 = vpop.eup %1316  ;;  %v1197_v51 = vadd.f32 %v1196_v2, %v1195_v48  ;;  %v1198_v52 = vpop.f32.mrb[50].mxu0 }
 0x2e2   :  { %v1019_v53 = vadd.f32 -1.5, %v1003_v49  ;;  %v1004_v54 = vmul.f32 3.5, %v1317_v50  ;;  %v1199_v7 = vpop.f32.mrb[51].mxu0 }
 0x2e3   :  { %v953_v55 = vadd.f32 %v1197_v51, %v1632_v60  ;;  %v1200_v56 = vadd.f32 %v1199_v7, %v1198_v52 }
 0x2e4   :  { %v1038_v57 = vsel %vm1033_vm1, %v1019_v53, %v937_v26  ;;  %v1020_v58 = vadd.f32 -1.5, %v1004_v54 }
 0x2e5   :  { %1054 = vst [vmem:[#allocation7 + $0x20] sm:$0xff] %v1038_v57  ;;  %1322 = vtanh.f32 %v953_v55  ;;  %v956_v59 = vadd.f32 %v1200_v56, %v1632_v60 }
 0x2e6   :  { %v1039_v62 = vsel %vm1033_vm1, %v1020_v58, %v940_v29 }
 0x2e7   :  { %v1319_v63 = vpop.eup %1318  ;;  %1055 = vst [vmem:[#allocation7 + $0x28] sm:$0xff] %v1039_v62  ;;  %1324 = vtanh.f32 %v956_v59  ;;  %v1201_v1 = vpop.f32.mrb[52].mxu0 }
 0x2e8   :  { %v1005_v3 = vmul.f32 3.5, %v1319_v63  ;;  %v1202_v41 = vpop.f32.mrb[53].mxu0 }
 0x2e9   :  { %v1321_v4 = vpop.eup %1320  ;;  %v1203_v43 = vadd.f32 %v1202_v41, %v1201_v1  ;;  %v1204_v0 = vpop.f32.mrb[54].mxu0 }
 0x2ea   :  { %v1021_v5 = vadd.f32 -1.5, %v1005_v3  ;;  %v1006_v6 = vmul.f32 3.5, %v1321_v4  ;;  %v1205_v8 = vpop.f32.mrb[55].mxu0 }
 0x2eb   :  { %v961_v9 = vadd.f32 %v1203_v43, %v1632_v60  ;;  %v1206_v10 = vadd.f32 %v1205_v8, %v1204_v0 }
 0x2ec   :  { %v1040_v12 = vsel %vm1033_vm1, %v1021_v5, %v945_v39  ;;  %v1022_v15 = vadd.f32 -1.5, %v1006_v6 }
 0x2ed   :  { %1056 = vst [vmem:[#allocation7 + $0x30] sm:$0xff] %v1040_v12  ;;  %1326 = vtanh.f32 %v961_v9  ;;  %v964_v16 = vadd.f32 %v1206_v10, %v1632_v60 }
 0x2ee   :  { %v1041_v17 = vsel %vm1033_vm1, %v1022_v15, %v948_v45 }
 0x2ef   :  { %v1323_v18 = vpop.eup %1322  ;;  %1057 = vst [vmem:[#allocation7 + $0x38] sm:$0xff] %v1041_v17  ;;  %1328 = vtanh.f32 %v964_v16  ;;  %v1207_v19 = vpop.f32.mrb[56].mxu0 }
 0x2f0   :  { %v1007_v20 = vmul.f32 3.5, %v1323_v18  ;;  %v1208_v21 = vpop.f32.mrb[57].mxu0 }
 0x2f1   :  { %v1325_v22 = vpop.eup %1324  ;;  %v1209_v23 = vadd.f32 %v1208_v21, %v1207_v19  ;;  %v1210_v24 = vpop.f32.mrb[58].mxu0 }
 0x2f2   :  { %v1023_v25 = vadd.f32 -1.5, %v1007_v20  ;;  %v1008_v26 = vmul.f32 3.5, %v1325_v22  ;;  %v1211_v61 = vpop.f32.mrb[59].mxu0 }
 0x2f3   :  { %v969_v27 = vadd.f32 %v1209_v23, %v1632_v60  ;;  %v1212_v28 = vadd.f32 %v1211_v61, %v1210_v24 }
 0x2f4   :  { %v1042_v29 = vsel %vm1033_vm1, %v1023_v25, %v953_v55  ;;  %v1024_v30 = vadd.f32 -1.5, %v1008_v26 }
 0x2f5   :  { %1058 = vst [vmem:[#allocation7 + $0x40] sm:$0xff] %v1042_v29  ;;  %1330 = vtanh.f32 %v969_v27  ;;  %v972_v31 = vadd.f32 %v1212_v28, %v1632_v60 }
 0x2f6   :  { %v1043_v32 = vsel %vm1033_vm1, %v1024_v30, %v956_v59 }
 0x2f7   :  { %v1327_v33 = vpop.eup %1326  ;;  %1059 = vst [vmem:[#allocation7 + $0x48] sm:$0xff] %v1043_v32  ;;  %1332 = vtanh.f32 %v972_v31  ;;  %v1213_v34 = vpop.f32.mrb[60].mxu0 }
 0x2f8   :  { %v1009_v35 = vmul.f32 3.5, %v1327_v33  ;;  %v1214_v36 = vpop.f32.mrb[61].mxu0 }
 0x2f9   :  { %v1329_v37 = vpop.eup %1328  ;;  %v1215_v11 = vadd.f32 %v1214_v36, %v1213_v34  ;;  %v1216_v13 = vpop.f32.mrb[62].mxu0 }
 0x2fa   :  { %v1025_v38 = vadd.f32 -1.5, %v1009_v35  ;;  %v1010_v39 = vmul.f32 3.5, %v1329_v37  ;;  %v1217_v40 = vpop.f32.mrb[63].mxu0 }
 0x2fb   :  { %v977_v42 = vadd.f32 %v1215_v11, %v1632_v60  ;;  %v1218_v44 = vadd.f32 %v1217_v40, %v1216_v13 }
 0x2fc   :  { %v1044_v45 = vsel %vm1033_vm1, %v1025_v38, %v961_v9  ;;  %v1026_v46 = vadd.f32 -1.5, %v1010_v39 }
 0x2fd   :  { %1060 = vst [vmem:[#allocation7 + $0x50] sm:$0xff] %v1044_v45  ;;  %1334 = vtanh.f32 %v977_v42  ;;  %v980_v47 = vadd.f32 %v1218_v44, %v1632_v60 }
 0x2fe   :  { %v1045_v48 = vsel %vm1033_vm1, %v1026_v46, %v964_v16 }
 0x2ff   :  { %v1331_v49 = vpop.eup %1330  ;;  %1061 = vst [vmem:[#allocation7 + $0x58] sm:$0xff] %v1045_v48  ;;  %1336 = vtanh.f32 %v980_v47 }
 0x300   :  { %v1011_v2 = vmul.f32 3.5, %v1331_v49 }
 0x301   :  { %v1333_v50 = vpop.eup %1332 }
 0x302   :  { %v1027_v51 = vadd.f32 -1.5, %v1011_v2  ;;  %v1012_v52 = vmul.f32 3.5, %v1333_v50 }
 0x304   :  { %v1046_v53 = vsel %vm1033_vm1, %v1027_v51, %v969_v27  ;;  %v1028_v54 = vadd.f32 -1.5, %v1012_v52 }
 0x305   :  { %1062 = vst [vmem:[#allocation7 + $0x60] sm:$0xff] %v1046_v53 }
 0x306   :  { %v1047_v7 = vsel %vm1033_vm1, %v1028_v54, %v972_v31 }
 0x307   :  { %v1335_v55 = vpop.eup %1334  ;;  %1063 = vst [vmem:[#allocation7 + $0x68] sm:$0xff] %v1047_v7 }
 0x308   :  { %v1013_v60 = vmul.f32 3.5, %v1335_v55 }
 0x309   :  { %v1337_v56 = vpop.eup %1336 }
 0x30a   :  { %v1029_v57 = vadd.f32 -1.5, %v1013_v60  ;;  %v1014_v58 = vmul.f32 3.5, %v1337_v56 }
 0x30c   :  { %v1048_v59 = vsel %vm1033_vm1, %v1029_v57, %v977_v42  ;;  %v1030_v62 = vadd.f32 -1.5, %v1014_v58 }
 0x30d   :  { %1064 = vst [vmem:[#allocation7 + $0x70] sm:$0xff] %v1048_v59 }
 0x30e   :  { %v1049_v63 = vsel %vm1033_vm1, %v1030_v62, %v980_v47 }
 0x30f   :  { %1065 = vst [vmem:[#allocation7 + $0x78] sm:$0xff] %v1049_v63 }
 0x310   :  { %1393 = shalt.err (!%p1390_p6)
}
 0x311   :  { %s1394_s13 = scalar_lea.hbm %s1708_s7, 2048 }
 0x312   :  { %p1395_p7 = scmp.ne.s32.totalorder %s1708_s7, %s1394_s13  ;;  %p1398_p8 = scmp.lt.u32.totalorder %s1394_s13, %s1708_s7 }
 0x314   :  { %p1400_p9 = pnand %p1398_p8, %p1395_p7 }
 0x316   :  { %1403 = shalt.err (!%p1400_p9)
}
 0x317   :  { %1077 = dma.vmem_to_hbm [thread:$0]  %s1072_s8, 2048, %s1708_s7, [#allocation4], %s1411_s11, %s1411_s11, %s1412_s12  }
 0x318   :  { %1408 = dma.done.wait [#allocation4], 2048  }
 0x319   :  { %1409 = vsyncadd [#allocation4], 4294965248 }
 0x31a   :  { %1081 = vsyncpa [#allocation3], 1 }
 0x31b   :  { %1082 = vsyncpa [#allocation6], 1 }
 0x31c   :  { %1083 = vsyncpa [#allocation4], 1 }

</bundles_post_ra>
